<compile_context>
chip_gen: v6e
topology: v6e:2x2x1
jax: 0.10.0
libtpu: 0.0.40
codegen_flags: <defaults>
</compile_context>

<pallas_src>
import jax
import jax.numpy as jnp
from jax import lax
from jax.experimental import pallas as pl
from jax.experimental.pallas import tpu as pltpu

_SQRT_HALF = 0.7071067811865476     # 1/sqrt(2), exact-erf GELU (torch nn.GELU default)


def _round_up(n, m):
    return ((n + m - 1) // m) * m


def _vmem_capacity_bytes():
    """Per-core VMEM capacity from the chip; conservative 64 MiB (v7x) fallback."""
    try:
        cap = int(getattr(pltpu.get_tpu_info(), "vmem_capacity_bytes", 0))
        if cap > 0:
            return cap
    except Exception:
        pass
    return 64 * 1024 * 1024


def _vmem_estimate(tile_m, dim, tk, x_elt):
    """VMEM-resident bytes for one grid step (default double-buffered in/out specs)."""
    io = 4 * tile_m * dim * x_elt                 # x-in + out tiles, 2 buffers each
    weights = 2 * 2 * dim * tk * 2                # W1/W2 blocks, bf16, 2 buffers each
    biases = 2 * 2 * (tk + dim) * 4
    acc = tile_m * dim * 4                        # f32 accumulator scratch
    temps = 4 * tile_m * max(tk, dim) * 4         # h (f32), bf16 copies, elementwise temps
    return io + weights + biases + acc + temps


def _next_smaller_tk(dim, tk):
    """Largest tk' < tk with dim % tk' == 0 and tk' % 128 == 0 (None if none)."""
    best = None
    t = 128
    while t < tk:
        if dim % t == 0:
            best = t
        t += 128
    return best


def _ln_mlp_kernel(x_ref, w1_ref, b1_ref, w2_ref, b2_ref, o_ref, acc_ref):
    """Row tile x hidden-dim block of:  out = x + (gelu(x @ W1 + b1) @ W2 + b2)."""
    k = pl.program_id(1)

    @pl.when(k == 0)
    def _():
        acc_ref[...] = jnp.zeros_like(acc_ref)

    # Linear 1, hidden columns [k*tk, (k+1)*tk): bf16 operands on the MXU, f32 acc.
    h = jnp.dot(x_ref[...].astype(jnp.bfloat16), w1_ref[...],
                preferred_element_type=jnp.float32)
    h = h + b1_ref[...]                               # (1, tk) f32 broadcast

    # Exact (erf) GELU in f32 -- matches torch.nn.GELU() default.
    # (jax.nn.gelu(approximate=True) is cheaper on v5e's VPU if bit-parity with
    #  torch is not required.)
    h = 0.5 * h * (1.0 + lax.erf(h * _SQRT_HALF))

    # Linear 2 partial product, accumulated in f32 across k blocks.
    acc_ref[...] += jnp.dot(h.astype(jnp.bfloat16), w2_ref[...],
                            preferred_element_type=jnp.float32)

    @pl.when(k == pl.num_programs(1) - 1)
    def _():
        # Dropout is identity in eval mode.  Residual add in f32; the x->f32
        # cast is deferred to here (no long-lived f32 copy of x).
        y = acc_ref[...] + b2_ref[...]
        o_ref[...] = (x_ref[...].astype(jnp.float32) + y).astype(o_ref.dtype)


def ln_mlp_forward(x, w1, b1, w2, b2, *, tile_m=None, tk=None):
    """x: [M, dim].  w1/w2: [dim, dim] stored (in, out) = torch weight.T.
    b1/b2: [1, dim].  Returns [M, dim] in x.dtype."""
    M, dim = x.shape
    assert w1.shape == (dim, dim) and w2.shape == (dim, dim), \
        "weights must be (dim, dim) in (in, out) layout (i.e. torch weight.T)"
    assert b1.shape == (1, dim) and b2.shape == (1, dim), "biases must be (1, dim)"

    # One-time wrapper-side casts: MXU-native bf16 weights, f32 biases.
    w1 = w1 if w1.dtype == jnp.bfloat16 else w1.astype(jnp.bfloat16)
    w2 = w2 if w2.dtype == jnp.bfloat16 else w2.astype(jnp.bfloat16)
    b1 = b1 if b1.dtype == jnp.float32 else b1.astype(jnp.float32)
    b2 = b2 if b2.dtype == jnp.float32 else b2.astype(jnp.float32)

    x_elt = jnp.dtype(x.dtype).itemsize
    vmem_cap = _vmem_capacity_bytes()
    tile_cap = int(0.70 * vmem_cap)       # tile working-set budget
    limit_max = int(0.85 * vmem_cap)      # never request more than the chip has

    # ---- Row tile: large, sublane-aligned, >= 2 tiles when possible (megacore). ----
    if tile_m is None:
        tile_m = 1024 if x_elt <= 2 else 512
    tile_m = min(tile_m, _round_up(M, 8))
    if M > 8:
        tile_m = min(tile_m, _round_up(pl.cdiv(M, 2), 8))  # >= 2 row tiles for 2 TCs
    tile_m = max(8, _round_up(tile_m, 8))

    # ---- Hidden-dim tile: largest 128-aligned divisor of dim that fits VMEM. ----
    if tk is None:
        tk = dim
        while _vmem_estimate(tile_m, dim, tk, x_elt) > tile_cap:
            nxt = _next_smaller_tk(dim, tk)
            if nxt is not None:
                tk = nxt
            elif tile_m > 8:
                tile_m = max(8, _round_up(tile_m // 2, 8))
            else:
                break
    assert dim % tk == 0 and (tk == dim or tk % 128 == 0), \
        "tk must divide dim and be lane-aligned (multiple of 128) or equal dim"

    # Ragged last row tile is read-padded / write-masked by Pallas (no jnp.pad).
    grid = (pl.cdiv(M, tile_m), dim // tk)

    est = _vmem_estimate(tile_m, dim, tk, x_elt)
    vmem_limit = int(min(max(est + (8 << 20), 32 << 20), limit_max))
    cost = pl.CostEstimate(
        flops=4 * M * dim * dim,                            # two dim x dim matmuls
        transcendentals=M * dim,                            # erf
        bytes_accessed=(2 * M * dim * x_elt                 # x in + out
                        + grid[0] * 2 * dim * dim * 2       # bf16 weights per row tile
                        + 2 * dim * 4),                     # biases
    )

    return pl.pallas_call(
        _ln_mlp_kernel,
        out_shape=jax.ShapeDtypeStruct((M, dim), x.dtype),
        grid_spec=pltpu.PrefetchScalarGridSpec(
            num_scalar_prefetch=0,
            grid=grid,
            in_specs=[
                pl.BlockSpec((tile_m, dim), lambda i, k: (i, 0)),   # x row tile (resident over k)
                pl.BlockSpec((dim, tk), lambda i, k: (0, k)),       # W1[:, k-block]  (bf16)
                pl.BlockSpec((1, tk), lambda i, k: (0, k)),         # b1[k-block]
                pl.BlockSpec((tk, dim), lambda i, k: (k, 0)),       # W2[k-block, :]  (bf16)
                pl.BlockSpec((1, dim), lambda i, k: (0, 0)),        # b2
            ],
            out_specs=pl.BlockSpec((tile_m, dim), lambda i, k: (i, 0)),
            scratch_shapes=[pltpu.VMEM((tile_m, dim), jnp.float32)],  # y accumulator
        ),
        compiler_params=pltpu.CompilerParams(
            dimension_semantics=("parallel", "arbitrary"),
            vmem_limit_bytes=vmem_limit,
        ),
        cost_estimate=cost,
    )(x, w1, b1, w2, b2)


def ln_mlp_apply(feature, params, *, tile_m=None, tk=None):
    """feature: [..., dim] -> same shape & dtype."""
    dim = feature.shape[-1]
    lead = feature.shape[:-1]
    x = feature.reshape(-1, dim)            # keep caller dtype end to end
    out = ln_mlp_forward(x, params["w1_t"], params["b1"],
                         params["w2_t"], params["b2"], tile_m=tile_m, tk=tk)
    return out.reshape(*lead, dim)


def init_params(key, dim, *, mxu_dtype=jnp.bfloat16):
    """Deterministic init mimicking torch.nn.Linear (uniform +-1/sqrt(fan_in)).

    torch Linear weight is (out, in); we store the transpose (in, out) in the
    MXU-native dtype (bf16).  Biases stay f32 (added after f32 accumulation).
    NOTE: weights are square, so layout cannot be shape-checked -- callers
    porting torch weights must pass weight.T.
    """
    k1, k2, k3, k4 = jax.random.split(key, 4)
    bound = 1.0 / (dim ** 0.5)
    w1 = jax.random.uniform(k1, (dim, dim), jnp.float32, -bound, bound)
    b1 = jax.random.uniform(k2, (1, dim), jnp.float32, -bound, bound)
    w2 = jax.random.uniform(k3, (dim, dim), jnp.float32, -bound, bound)
    b2 = jax.random.uniform(k4, (1, dim), jnp.float32, -bound, bound)
    return {"w1_t": w1.T.astype(mxu_dtype), "b1": b1,
            "w2_t": w2.T.astype(mxu_dtype), "b2": b2}


def _reference(x, params, *, match_kernel_precision=True):
    """Pure-JAX reference.  match_kernel_precision mirrors the bf16 MXU operand
    rounding (with f32 accumulation) used by the kernel."""
    w1 = params["w1_t"].astype(jnp.float32)
    w2 = params["w2_t"].astype(jnp.float32)
    x_f32 = x.astype(jnp.float32)
    xm = x_f32.astype(jnp.bfloat16).astype(jnp.float32) if match_kernel_precision else x_f32
    h = xm @ w1 + params["b1"]
    h = 0.5 * h * (1.0 + lax.erf(h * _SQRT_HALF))
    if match_kernel_precision:
        h = h.astype(jnp.bfloat16).astype(jnp.float32)
    y = h @ w2 + params["b2"]
    return (x_f32 + y).astype(x.dtype)


if __name__ == "__main__":
    key = jax.random.PRNGKey(0)
    k_feat, k_feat2, k_feat3, k_par, k_par3 = jax.random.split(key, 5)

    dim = 128
    params = init_params(k_par, dim)

    # Small shape consistent with the module: feature [batch, seq, dim].
    feature = jax.random.normal(k_feat, (2, 8, dim), jnp.float32)
    out = jax.block_until_ready(ln_mlp_apply(feature, params))
    assert out.shape == feature.shape and out.dtype == feature.dtype

    ref_matched = _reference(feature.reshape(-1, dim), params, match_kernel_precision=True)
    ref_exact = _reference(feature.reshape(-1, dim), params, match_kernel_precision=False)
    assert jnp.allclose(out.reshape(-1, dim), ref_matched, atol=2e-3, rtol=2e-3), \
        "mismatch vs precision-matched reference"
    assert jnp.allclose(out.reshape(-1, dim), ref_exact, atol=3e-2, rtol=3e-2), \
        "mismatch vs exact f32 reference"

    # Ragged / multi-row-tile path (M=600): exercises the Pallas-masked overhanging
    # last row tile and the >=2-row-tile megacore split (no wrapper pad/slice).
    feature2 = jax.random.normal(k_feat2, (3, 200, dim), jnp.float32)
    out2 = jax.block_until_ready(ln_mlp_apply(feature2, params))
    assert out2.shape == feature2.shape and out2.dtype == feature2.dtype
    ref2 = _reference(feature2.reshape(-1, dim), params, match_kernel_precision=True)
    assert jnp.allclose(out2.reshape(-1, dim), ref2, atol=2e-3, rtol=2e-3), \
        "mismatch vs reference (ragged M)"

    # Hidden-dim-tiled path: force tk < dim so the "arbitrary" k axis and the
    # f32 accumulator init/finalize logic are exercised.
    dim3 = 256
    params3 = init_params(k_par3, dim3)
    feature3 = jax.random.normal(k_feat3, (4, 32, dim3), jnp.float32)
    out3 = jax.block_until_ready(ln_mlp_apply(feature3, params3, tk=128))
    assert out3.shape == feature3.shape and out3.dtype == feature3.dtype
    ref3 = _reference(feature3.reshape(-1, dim3), params3, match_kernel_precision=True)
    assert jnp.allclose(out3.reshape(-1, dim3), ref3, atol=2e-3, rtol=2e-3), \
        "mismatch vs reference (hidden-dim tiling)"

    # bf16 activations keep their dtype end to end.
    feature_bf16 = feature.astype(jnp.bfloat16)
    out_bf16 = jax.block_until_ready(ln_mlp_apply(feature_bf16, params))
    assert out_bf16.shape == feature_bf16.shape and out_bf16.dtype == jnp.bfloat16
    ref_bf16 = _reference(feature_bf16.reshape(-1, dim), params, match_kernel_precision=True)
    assert jnp.allclose(out_bf16.reshape(-1, dim).astype(jnp.float32),
                        ref_bf16.astype(jnp.float32), atol=5e-2, rtol=5e-2), \
        "mismatch vs reference (bf16 activations)"

    print("KERNEL_OK")
</pallas_src>

<mosaic_0001>
module attributes {stable_mosaic.version = 11 : i64} {
  func.func @_ln_mlp_kernel(%arg0: i32, %arg1: i32, %arg2: memref<8x128xf32, #tpu.memory_space<vmem>>, %arg3: memref<128x128xbf16, #tpu.memory_space<vmem>>, %arg4: memref<1x128xf32, #tpu.memory_space<vmem>>, %arg5: memref<128x128xbf16, #tpu.memory_space<vmem>>, %arg6: memref<1x128xf32, #tpu.memory_space<vmem>>, %arg7: memref<8x128xf32, #tpu.memory_space<vmem>>, %arg8: memref<8x128xf32, #tpu.memory_space<vmem>>) attributes {dimension_semantics = [#tpu.dimension_semantics<parallel>, #tpu.dimension_semantics<arbitrary>], iteration_bounds = array<i64: 2, 1>, scalar_prefetch = 0 : i64, scratch_operands = 1 : i64, tpu.core_type = #tpu.core_type<tc>, window_params = [{transform_indices = @transform_0, window_bounds = array<i64: 8, 128>}, {transform_indices = @transform_1, window_bounds = array<i64: 128, 128>}, {transform_indices = @transform_2, window_bounds = array<i64: 1, 128>}, {transform_indices = @transform_3, window_bounds = array<i64: 128, 128>}, {pipeline_mode = #tpu.pipeline_mode<synchronous>, transform_indices = @transform_4, window_bounds = array<i64: 1, 128>}, {transform_indices = @transform_5, window_bounds = array<i64: 8, 128>}]} {
    %c0_i32 = arith.constant 0 : i32
    %0 = arith.cmpi eq, %arg1, %c0_i32 : i32
    %1 = arith.extui %0 : i1 to i32
    %c0_i32_0 = arith.constant 0 : i32
    %2 = arith.cmpi ne, %1, %c0_i32_0 : i32
    scf.if %2 {
      %cst_18 = arith.constant 0.000000e+00 : f32
      %27 = vector.broadcast %cst_18 : f32 to vector<8x128xf32>
      %c0_19 = arith.constant 0 : index
      %c0_20 = arith.constant 0 : index
      %28 = vector.load %arg8[%c0_19, %c0_20] : memref<8x128xf32, #tpu.memory_space<vmem>>, vector<8x128xf32>
      tpu.vector_store %arg8[%c0_19, %c0_20], %27 {strides = array<i32>} : memref<8x128xf32, #tpu.memory_space<vmem>>, vector<8x128xf32>,
    } else {
    }
    %c0 = arith.constant 0 : index
    %c0_1 = arith.constant 0 : index
    %3 = vector.load %arg2[%c0, %c0_1] : memref<8x128xf32, #tpu.memory_space<vmem>>, vector<8x128xf32>
    %4 = arith.truncf %3 : vector<8x128xf32> to vector<8x128xbf16>
    %c0_2 = arith.constant 0 : index
    %c0_3 = arith.constant 0 : index
    %5 = vector.load %arg3[%c0_2, %c0_3] : memref<128x128xbf16, #tpu.memory_space<vmem>>, vector<128x128xbf16>
    %cst = arith.constant dense<0.000000e+00> : vector<8x128xf32>
    %6 = tpu.matmul %4, %5, %cst {dimension_numbers = #tpu.dot_dimension_numbers<[1], [0], [0], [1], [0, 0, 1, 1], [], []>} : vector<8x128xbf16>, vector<128x128xbf16>, vector<8x128xf32> -> vector<8x128xf32>
    %c0_4 = arith.constant 0 : index
    %c0_5 = arith.constant 0 : index
    %7 = vector.load %arg4[%c0_4, %c0_5] : memref<1x128xf32, #tpu.memory_space<vmem>>, vector<1x128xf32>
    %8 = vector.broadcast %7 : vector<1x128xf32> to vector<8x128xf32>
    %9 = arith.addf %6, %8 : vector<8x128xf32>
    %cst_6 = arith.constant 5.000000e-01 : f32
    %10 = vector.broadcast %cst_6 : f32 to vector<8x128xf32>
    %11 = arith.mulf %10, %9 : vector<8x128xf32>
    %cst_7 = arith.constant 0.707106769 : f32
    %12 = vector.broadcast %cst_7 : f32 to vector<8x128xf32>
    %13 = arith.mulf %9, %12 : vector<8x128xf32>
    %14 = math.erf %13 : vector<8x128xf32>
    %cst_8 = arith.constant 1.000000e+00 : f32
    %15 = vector.broadcast %cst_8 : f32 to vector<8x128xf32>
    %16 = arith.addf %15, %14 : vector<8x128xf32>
    %17 = arith.mulf %11, %16 : vector<8x128xf32>
    %c0_9 = arith.constant 0 : index
    %c0_10 = arith.constant 0 : index
    %18 = vector.load %arg8[%c0_9, %c0_10] : memref<8x128xf32, #tpu.memory_space<vmem>>, vector<8x128xf32>
    %19 = arith.truncf %17 : vector<8x128xf32> to vector<8x128xbf16>
    %c0_11 = arith.constant 0 : index
    %c0_12 = arith.constant 0 : index
    %20 = vector.load %arg5[%c0_11, %c0_12] : memref<128x128xbf16, #tpu.memory_space<vmem>>, vector<128x128xbf16>
    %cst_13 = arith.constant dense<0.000000e+00> : vector<8x128xf32>
    %21 = tpu.matmul %19, %20, %cst_13 {dimension_numbers = #tpu.dot_dimension_numbers<[1], [0], [0], [1], [0, 0, 1, 1], [], []>} : vector<8x128xbf16>, vector<128x128xbf16>, vector<8x128xf32> -> vector<8x128xf32>
    %22 = arith.addf %18, %21 : vector<8x128xf32>
    %c0_14 = arith.constant 0 : index
    %c0_15 = arith.constant 0 : index
    %23 = vector.load %arg8[%c0_14, %c0_15] : memref<8x128xf32, #tpu.memory_space<vmem>>, vector<8x128xf32>
    tpu.vector_store %arg8[%c0_14, %c0_15], %22 {strides = array<i32>} : memref<8x128xf32, #tpu.memory_space<vmem>>, vector<8x128xf32>,
    %c0_i32_16 = arith.constant 0 : i32
    %24 = arith.cmpi eq, %arg1, %c0_i32_16 : i32
    %25 = arith.extui %24 : i1 to i32
    %c0_i32_17 = arith.constant 0 : i32
    %26 = arith.cmpi ne, %25, %c0_i32_17 : i32
    scf.if %26 {
      %c0_18 = arith.constant 0 : index
      %c0_19 = arith.constant 0 : index
      %27 = vector.load %arg8[%c0_18, %c0_19] : memref<8x128xf32, #tpu.memory_space<vmem>>, vector<8x128xf32>
      %c0_20 = arith.constant 0 : index
      %c0_21 = arith.constant 0 : index
      %28 = vector.load %arg6[%c0_20, %c0_21] : memref<1x128xf32, #tpu.memory_space<vmem>>, vector<1x128xf32>
      %29 = vector.broadcast %28 : vector<1x128xf32> to vector<8x128xf32>
      %30 = arith.addf %27, %29 : vector<8x128xf32>
      %c0_22 = arith.constant 0 : index
      %c0_23 = arith.constant 0 : index
      %31 = vector.load %arg2[%c0_22, %c0_23] : memref<8x128xf32, #tpu.memory_space<vmem>>, vector<8x128xf32>
      %32 = arith.addf %31, %30 : vector<8x128xf32>
      %c0_24 = arith.constant 0 : index
      %c0_25 = arith.constant 0 : index
      %33 = vector.load %arg7[%c0_24, %c0_25] : memref<8x128xf32, #tpu.memory_space<vmem>>, vector<8x128xf32>
      tpu.vector_store %arg7[%c0_24, %c0_25], %32 {strides = array<i32>} : memref<8x128xf32, #tpu.memory_space<vmem>>, vector<8x128xf32>,
    } else {
    }
    return
  }
  func.func @transform_0(%arg0: i32, %arg1: i32) -> (i32, i32) {
    %c0_i32 = arith.constant 0 : i32
    %c0_i32_0 = arith.constant 0 : i32
    return %arg0, %c0_i32 : i32, i32
  }
  func.func @transform_1(%arg0: i32, %arg1: i32) -> (i32, i32) {
    %c0_i32 = arith.constant 0 : i32
    %c0_i32_0 = arith.constant 0 : i32
    return %c0_i32, %arg1 : i32, i32
  }
  func.func @transform_2(%arg0: i32, %arg1: i32) -> (i32, i32) {
    %c0_i32 = arith.constant 0 : i32
    %c0_i32_0 = arith.constant 0 : i32
    return %c0_i32, %arg1 : i32, i32
  }
  func.func @transform_3(%arg0: i32, %arg1: i32) -> (i32, i32) {
    %c0_i32 = arith.constant 0 : i32
    %c0_i32_0 = arith.constant 0 : i32
    return %arg1, %c0_i32 : i32, i32
  }
  func.func @transform_4(%arg0: i32, %arg1: i32) -> (i32, i32) {
    %c0_i32 = arith.constant 0 : i32
    %c0_i32_0 = arith.constant 0 : i32
    %c0_i32_1 = arith.constant 0 : i32
    return %c0_i32, %c0_i32_0 : i32, i32
  }
  func.func @transform_5(%arg0: i32, %arg1: i32) -> (i32, i32) {
    %c0_i32 = arith.constant 0 : i32
    %c0_i32_0 = arith.constant 0 : i32
    return %arg0, %c0_i32 : i32, i32
  }
}

</mosaic_0001>

<bundles_post_ra>
// kernel: tpu_custom_call.1
= control target key start
LH: loop header
LB: loop body
LE: loop exit
PB: predicated region body
PF: predicated region fallthrough
CT: control target
= control target key end

     0   :  { %s1287_s0 = inlined_call_operand.hbm [shape: f32[16,128], index: 0, kind: input, shape index: {}]   ;;  %s1288_s1 = inlined_call_operand.hbm [shape: bf16[128,128], index: 1, kind: input, shape index: {}]   ;;  %s1289_s2 = inlined_call_operand.vmem [shape: f32[1,128], index: 2, kind: input, shape index: {}]   ;;  %s1290_s3 = inlined_call_operand.hbm [shape: bf16[128,128], index: 3, kind: input, shape index: {}]   ;;  %s1291_s4 = inlined_call_operand.vmem [shape: f32[1,128], index: 4, kind: input, shape index: {}]   ;;  %s1292_s5 = inlined_call_operand.hbm [shape: f32[16,128], index: 5, kind: output, shape index: {}]  }
   0x1   :  { %1296 = sst [smem:[#allocation13_spill]] %s1288_s1 }
   0x2   :  { %10 = vsyncpa [#allocation4], 0 }
   0x3   :  { %12 = vsyncpa [#allocation4 + $0x1], 0 }
   0x4   :  { %13 = vsyncpa [#allocation7], 0 }
   0x5   :  { %14 = vsyncpa [#allocation5], 0 }
   0x6   :  { %16 = vsyncpa [#allocation5 + $0x1], 0  ;;  %s1088_s18 = smov 0   ;;  %s1090_s19 = smov 0  }
   0x7   :  { %s1092_s20 = smov 0   ;;  %s1094_s21 = smov 0  }
   0x8   :  { %s1096_s22 = smov 0   ;;  %s1098_s23 = smov 0  }
   0x9 LB: > { %s685_s24 = sadd.s32 4294967295, %s1048_s23   ;;  %s686_s25 = sadd.s32 4294967294, %s1048_s23   ;;  %s1048_s23 = sphi %s1098_s23, %s22_s23   ;;  %s1044_s22 = sphi %s1096_s22, %s1314_s22   ;;  %s1040_s21 = sphi %s1094_s21, %s1313_s21   ;;  %s1036_s20 = sphi %s1092_s20, %s1312_s20   ;;  %s1032_s19 = sphi %s1090_s19, %s1311_s19   ;;  %s1028_s18 = sphi %s1088_s18, %s1310_s18  }
   0xa   : > { %p54_p0 = scmp.ne.s32.totalorder %s1032_s19, %s1028_s18  ;;  %p1122_p1 = scmp.eq.s32.totalorder %s685_s24, 0 }
   0xb   : > { %p1126_p2 = scmp.eq.s32.totalorder %s685_s24, 1  ;;  %p183_p3 = scmp.eq.s32.totalorder %s686_s25, 1 }
   0xc   : > { %s1297_s26 = scalar_select %p1122_p1, 1, 0 }
   0xd   : > { %p1132_p4 = por %p1122_p1, %p54_p0  ;;  %p687_p5 = scmp.ge.s32.totalorder %s1048_s23, 1 }
   0xe   : > { %p1137_p6 = por %p183_p3, %p54_p0  ;;  %p190_p7 = scmp.lt.s32.totalorder %s1048_s23, 3 }
   0xf   : > { %s1299_s28 = scalar_select %p1132_p4, 1, 0 }
  0x10   : > { %s1300_s29 = scalar_select %p1137_p6, 1, 0 }
  0x11   : > { %p1142_p8 = pnand %p687_p5, %p190_p7  ;;  %s1050_s6 = smov [#allocation6]  }
  0x12   : > { %s204_s7 = sshll.u32 %s1050_s6, 4  ;;  %s1051_s9 = smov [#allocation8]   ;;  %s205_s7 = int_to_ptr.vmem [resolvable:$true] %s204_s7 }
  0x13   : > { %p791_p9 = pneg %p1142_p8  ;;  %s226_s10 = sshll.u32 %s1051_s9, 4  ;;  %s227_s10 = int_to_ptr.vmem [resolvable:$true] %s226_s10 }
  0x14   : > { %s895_s11 = scalar_lea.vmem %s205_s7, 1024  ;;  %p903_p5 = scmp.lt.s32.totalorder %s205_s7, %s205_s7 }
  0x15   : > { %p1151_p11 = pnand %p791_p9, %p1122_p1  ;;  %p896_p13 = scmp.ne.s32.totalorder %s205_s7, %s895_s11 }
  0x16   : > { %p904_p7 = scmp.lt.s32.totalorder %s895_s11, %s895_s11 }
  0x17   : > { %p886_p12 = pneg %p1151_p11 }
  0x18   : > { %p905_p10 = por %p904_p7, %p903_p5 }
  0x19   : > { %p898_p0 = pnand %p896_p13, %p886_p12 }
  0x1b   : > { %p899_p3 = pneg %p898_p0 }
  0x1d   : > { %p906_p9 = pnand %p905_p10, %p899_p3 }
  0x1f   : > { %909 = shalt.err (!%p906_p9)
}
  0x20   : > { %s1052_s12 = smov 64   ;;  %s1053_s13 = smov 4  }
  0x21   : > { %s1303_s1 = sld [smem:[#allocation13_spill]]  ;;  %s921_s16 = scalar_lea.vmem %s227_s10, 1024 }
  0x22   : > { %p922_p6 = scmp.ne.s32.totalorder %s227_s10, %s921_s16  ;;  %p929_p1 = scmp.lt.s32.totalorder %s227_s10, %s227_s10 }
  0x23   : > { %p930_p4 = scmp.lt.s32.totalorder %s921_s16, %s921_s16 }
  0x24   : > { %p924_p13 = pnand %p922_p6, %p886_p12 }
  0x25   : > { %p931_p5 = por %p930_p4, %p929_p1 }
  0x26   : > { %p925_p0 = pneg %p924_p13 }
  0x27   : > { %794 = dma.hbm_to_vmem [thread:$0]  (!%p1151_p11), %s1303_s1, 1024, %s205_s7, [#allocation7], %s1052_s12, %s1052_s12, %s1053_s13  }
  0x28   : > { %p932_p10 = pnand %p931_p5, %p925_p0 }
  0x2a   : > { %935 = shalt.err (!%p932_p10)
}
  0x2b   : > { %797 = dma.hbm_to_vmem [thread:$0]  (!%p1151_p11), %s1290_s3, 1024, %s227_s10, [#allocation7], %s1052_s12, %s1052_s12, %s1053_s13  }
  0x2c   : > { %s34_s25 = sadd.s32 1, %s1044_s22  ;;  %s41_s6 = sadd.s32 1, %s1036_s20 }
  0x2d   : > { %p36_p1 = scmp.ge.s32.totalorder %s34_s25, 2  ;;  %p48_p4 = scmp.ne.s32.totalorder %s1036_s20, %s1032_s19 }
  0x2e   : > { %p49_p6 = scmp.eq.s32.totalorder %s1048_s23, 0  ;;  %p808_p12 = scmp.lt.s32.totalorder %s1048_s23, 2 }
  0x2f   : > { %s1316_s25 = smov (%p36_p1, %s34_s25), 0  ;;  %p1183_p7 = por %p1126_p2, %p48_p4 }
  0x30   : > { %p50_p3 = por %p49_p6, %p48_p4  ;;  %s38_s8 = ssub.s32 %s1044_s22, %s1316_s25 }
  0x31   : > { %s243_s9 = sand.u32 1, %s1036_s20   ;;  %p39_p9 = scmp.eq.s32.totalorder %s38_s8, 0 }
  0x32   : > { %s692_s10 = sshll.u32 %s243_s9, 3  ;;  %s693_s11 = sshll.u32 %s1044_s22, 7 }
  0x33   : > { %s1192_s12 = scalar_select %p39_p9, %s1036_s20, %s41_s6  }
  0x34   : > { %s252_s15 = scalar_lea.hbm %s1287_s0, %s693_s11  ;;  %s247_s16 = scalar_lea.vmem [#allocation3], %s692_s10 }
  0x35   : > { %s254_s17 = sshll.u32 %s247_s16, 4  ;;  %p1199_p11 = pnand %p808_p12, %p50_p3  ;;  %s255_s17 = int_to_ptr.vmem [resolvable:$true] %s254_s17 }
  0x36   : > { %s244_s24 = scalar_lea.sflag [#allocation4], %s243_s9  ;;  %s949_s8 = scalar_lea.vmem %s255_s17, 128 }
  0x37   : > { %p938_p2 = pneg %p1199_p11  ;;  %p950_p13 = scmp.ne.s32.totalorder %s255_s17, %s949_s8 }
  0x38   : > { %s1054_s6 = smov [#allocation3]  }
  0x39   : > { %p952_p0 = pnand %p950_p13, %p938_p2  ;;  %s954_s1 = sshll.u32 %s1054_s6, 4  ;;  %s955_s1 = int_to_ptr.vmem [resolvable:$false] %s954_s1 }
  0x3a   : > { %s956_s11 = scalar_lea.vmem %s955_s1, 256  ;;  %p957_p10 = scmp.lt.s32.totalorder %s255_s17, %s955_s1 }
  0x3b   : > { %p953_p5 = pneg %p952_p0  ;;  %p958_p1 = scmp.lt.s32.totalorder %s956_s11, %s949_s8 }
  0x3d   : > { %p959_p4 = por %p958_p1, %p957_p10 }
  0x3f   : > { %p960_p6 = pnand %p959_p4, %p953_p5 }
  0x41   : > { %963 = shalt.err (!%p960_p6)
}
  0x42   : > { %801 = dma.hbm_to_vmem [thread:$0]  (!%p1199_p11), %s252_s15, 128, %s255_s17, %s244_s24  }
  0x43   : > { %263 = sbr.rel (%p1142_p8) target bundleno = 538 (0x21a), region = 40  ;;  %s1210_s9 = sand.u32 (!%p1142_p8), 1, %s1032_s19  }
  0x44   : > { %s695_s10 = sshll.u32 (!%p1142_p8), %s1210_s9, 3  ;;  %s266_s13 = scalar_lea.sflag (!%p1142_p8), [#allocation4], %s1210_s9 }
  0x45   : > { %s1216_s1 = scalar_lea.vmem (!%p1142_p8), [#allocation3], %s695_s10  ;;  %p1306_p12 = scmp.ne.s32.totalorder (!%p1142_p8), %s1299_s28, 0 }
  0x48   : > { %1015 = dma.done.wait (%p1306_p12), %s266_s13, 128  }
  0x49   : > { %1017 = vsyncadd (%p1306_p12), %s266_s13, 4294967168  ;;  %p1307_p3 = scmp.ne.s32.totalorder %s1297_s26, 0 }
  0x4b   : > { %1019 = dma.done.wait (%p1307_p3), [#allocation7], 2048  }
  0x4c   : > { %1021 = vsyncadd (%p1307_p3), [#allocation7], 4294965248  ;;  %v1055_v0 = vmov 0.0   ;;  %vm1056_vm0 = vmmov 0   ;;  %v866_v1 = vld [vmem:[#allocation6 + $0x38] sm:$0xff]   ;;  %v867_v2 = vld [vmem:[#allocation6 + $0x30] sm:$0xff]  }
  0x4d   : > { %739 = vmatprep.subr.bf16.mxu0 %v1055_v0  ;;  %755 = vmatprep.mubr.msk.bf16.mxu0 %vm1056_vm0, %v1055_v0  ;;  %v868_v3 = vld [vmem:[#allocation6 + $0x28] sm:$0xff]   ;;  %v874_v4 = vld [vmem:[#allocation8 + $0x38] sm:$0xff]   ;;  %v869_v5 = vld [vmem:[#allocation6 + $0x20] sm:$0xff]   ;;  %s718_s15 = sshll.u32 %s1040_s21, 7  ;;  %s306_s16 = scalar_lea.vmem [#allocation9], %s695_s10 }
  0x4e   : > { %759 = vmatprep.subr.bf16.mxu1 %v1055_v0  ;;  %775 = vmatprep.mubr.msk.bf16.mxu1 %vm1056_vm0, %v1055_v0  ;;  %v875_v6 = vld [vmem:[#allocation8 + $0x30] sm:$0xff]   ;;  %v870_v7 = vld [vmem:[#allocation6 + $0x18] sm:$0xff]   ;;  %v872_v9 = vld [vmem:[#allocation6 + $0x8] sm:$0xff]   ;;  %s572_s17 = sshll.u32 %s306_s16, 4  ;;  %s1239_s8 = scalar_lea.hbm %s1292_s5, %s718_s15  ;;  %s1241_s17 = int_to_ptr.vmem [resolvable:$true] %s572_s17 }
  0x4f   : > { %740 = vmatpush3.bf16.msra.mxu0 %v866_v1  ;;  %760 = vmatpush3.bf16.msra.mxu1 %v874_v4  ;;  %v871_v8 = vld [vmem:[#allocation6 + $0x10] sm:$0xff]   ;;  %v873_v10 = vld [vmem:[#allocation6] sm:$0xff]   ;;  %v876_v13 = vld [vmem:[#allocation8 + $0x28] sm:$0xff]   ;;  %s559_s21 = scalar_lea.sflag [#allocation5], %s1210_s9  ;;  %s964_s6 = scalar_lea.vmem %s1241_s17, 128 }
  0x50   : > { %741 = vmatprep.subr.bf16.mxu0 %v1055_v0  ;;  %761 = vmatprep.subr.bf16.mxu1 %v1055_v0  ;;  %v317_v11 = vld [vmem:[%s1216_s1] sm:$0xff]  ;;  %v877_v14 = vld [vmem:[#allocation8 + $0x20] sm:$0xff]   ;;  %v880_v17 = vld [vmem:[#allocation8 + $0x8] sm:$0xff]   ;;  %p965_p8 = scmp.ne.s32.totalorder %s1241_s17, %s964_s6  ;;  %s1057_s11 = smov [#allocation9]  }
  0x51   : > { %v318_v12 = vpack.c.bf16 %v317_v11, %v317_v11  ;;  %v878_v15 = vld [vmem:[#allocation8 + $0x18] sm:$0xff]   ;;  %v879_v16 = vld [vmem:[#allocation8 + $0x10] sm:$0xff]   ;;  %v881_v18 = vld [vmem:[#allocation8] sm:$0xff]   ;;  %s968_s10 = sshll.u32 %s1057_s11, 4  ;;  %s969_s10 = int_to_ptr.vmem [resolvable:$false] %s968_s10 }
  0x52   : > { %v699_v19 = vld [vmem:[%s1289_s2] ss:$0 sm:$0xff]  ;;  %p966_p9 = pnand %p965_p8, %p1183_p7  ;;  %s970_s13 = scalar_lea.vmem %s969_s10, 256 }
  0x53   : > { %742 = vmatpush3.bf16.msra.mxu0 %v867_v2  ;;  %762 = vmatpush3.bf16.msra.mxu1 %v875_v6  ;;  %v716_v31 = vld [vmem:[%s1291_s4] ss:$0 sm:$0xff]  ;;  %p971_p2 = scmp.lt.s32.totalorder %s1241_s17, %s969_s10  ;;  %p972_p13 = scmp.lt.s32.totalorder %s970_s13, %s964_s6 }
  0x54   : > { %743 = vmatprep.subr.bf16.mxu0 %v1055_v0  ;;  %763 = vmatprep.subr.bf16.mxu1 %v1055_v0  ;;  %p967_p11 = pneg %p966_p9 }
  0x55   : > { %p973_p0 = por %p972_p13, %p971_p2 }
  0x57   : > { %744 = vmatpush3.bf16.msra.mxu0 %v868_v3  ;;  %764 = vmatpush3.bf16.msra.mxu1 %v876_v13  ;;  %p974_p5 = pnand %p973_p0, %p967_p11 }
  0x58   : > { %745 = vmatprep.subr.bf16.mxu0 %v1055_v0  ;;  %765 = vmatprep.subr.bf16.mxu1 %v1055_v0 }
  0x5b   : > { %746 = vmatpush3.bf16.msra.mxu0 %v869_v5  ;;  %766 = vmatpush3.bf16.msra.mxu1 %v877_v14 }
  0x5c   : > { %747 = vmatprep.subr.bf16.mxu0 %v1055_v0  ;;  %767 = vmatprep.subr.bf16.mxu1 %v1055_v0 }
  0x5f   : > { %748 = vmatpush3.bf16.msra.mxu0 %v870_v7  ;;  %768 = vmatpush3.bf16.msra.mxu1 %v878_v15 }
  0x60   : > { %749 = vmatprep.subr.bf16.mxu0 %v1055_v0  ;;  %769 = vmatprep.subr.bf16.mxu1 %v1055_v0 }
  0x63   : > { %750 = vmatpush3.bf16.msra.mxu0 %v871_v8  ;;  %770 = vmatpush3.bf16.msra.mxu1 %v879_v16 }
  0x64   : > { %751 = vmatprep.subr.bf16.mxu0 %v1055_v0  ;;  %771 = vmatprep.subr.bf16.mxu1 %v1055_v0 }
  0x67   : > { %752 = vmatpush3.bf16.msra.mxu0 %v872_v9  ;;  %772 = vmatpush3.bf16.msra.mxu1 %v880_v17 }
  0x68   : > { %753 = vmatprep.subr.bf16.mxu0 %v1055_v0  ;;  %773 = vmatprep.subr.bf16.mxu1 %v1055_v0 }
  0x6b   : > { %754 = vmatpush3.bf16.msra.mxu0 %v873_v10  ;;  %774 = vmatpush3.bf16.msra.mxu1 %v881_v18 }
  0x6e   : > { %756 = vmatmul.mubr.bf16.vlgmr.msra.gmra.mxu0 %v318_v12 }
 0x12e   : > { %v424_v20 = vpop.f32.mrf.mxu0 }
 0x12f   : > { %v425_v21 = vadd.f32 %v699_v19, %v424_v20 }
 0x130   : > { %v757_v22 = vpop.f32.mrf.mxu0 }
 0x131   : > { %v431_v23 = vmul.f32 0.70710677, %v425_v21  ;;  %v430_v27 = vmul.f32 0.5, %v425_v21 }
 0x132   : > { %v427_v24 = vpop.f32.mrf.mxu0 }
 0x133   : > { %882 = verf.f32 %v431_v23 }
 0x134   : > { %v758_v25 = vpop.f32.mrf.mxu0 }
 0x140   : > { %v883_v26 = vpop.eup %882 }
 0x141   : > { %v433_v28 = vadd.f32 1.0, %v883_v26 }
 0x143   : > { %v434_v29 = vmul.f32 %v433_v28, %v430_v27 }
 0x145   : > { %v436_v30 = vpack.c.bf16 %v434_v29, %v434_v29 }
 0x147   : > { %776 = vmatmul.mubr.bf16.vlgmr.msra.gmra.mxu1 %v436_v30 }
 0x207   : > { %v535_v32 = vpop.f32.mrf.mxu1 }
 0x208   : > { %v554_v33 = vadd.f32 %v716_v31, %v535_v32 }
 0x209   : > { %v777_v34 = vpop.f32.mrf.mxu1 }
 0x20a   : > { %v556_v35 = vadd.f32 %v554_v33, %v317_v11 }
 0x20b   : > { %v538_v36 = vpop.f32.mrf.mxu1 }
 0x20c   : > { %557 = vst [vmem:[%s306_s16] sm:$0xff] %v556_v35 }
 0x20d   : > { %v778_v37 = vpop.f32.mrf.mxu1 }
 0x20e   : > { %977 = shalt.err (!%p974_p5)
}
 0x20f   : > { %s978_s1 = scalar_lea.hbm %s1239_s8, 128  ;;  %s982_s28 = scalar_lea.hbm %s1292_s5, 256 }
 0x210   : > { %p979_p10 = scmp.ne.s32.totalorder %s1239_s8, %s978_s1  ;;  %p983_p6 = scmp.lt.s32.totalorder %s1239_s8, %s1292_s5 }
 0x211   : > { %p984_p12 = scmp.lt.s32.totalorder %s982_s28, %s978_s1 }
 0x212   : > { %p980_p1 = pnand %p979_p10, %p1183_p7 }
 0x213   : > { %p985_p3 = por %p984_p12, %p983_p6 }
 0x214   : > { %p981_p4 = pneg %p980_p1 }
 0x216   : > { %p986_p8 = pnand %p985_p3, %p981_p4 }
 0x218   : > { %989 = shalt.err (!%p986_p8)
}
 0x219   : > { %789 = dma.vmem_to_hbm [thread:$0]  (%p1183_p7), %s1241_s17, 128, %s1239_s8, %s559_s21  }
 0x21a PF: > { %s584_s15 = sand.u32 1, %s1028_s18   ;;  %p1308_p9 = scmp.ne.s32.totalorder %s1300_s29, 0 }
 0x21b   : > { %p1309_p11 = scmp.ge.s32.totalorder %s1048_s23, 2  ;;  %s585_s16 = scalar_lea.sflag [#allocation5], %s584_s15 }
 0x21d   : > { %p803_p2 = pnand %p1309_p11, %p1308_p9 }
 0x21f   : > { %p804_p13 = pneg %p803_p2 }
 0x221   : > { %1023 = dma.done.wait (%p804_p13), %s585_s16, 128  }
 0x222   : > { %1025 = vsyncadd (%p804_p13), %s585_s16, 4294967168  ;;  %s22_s23 = sadd.s32 1, %s1048_s23   ;;  %s1310_s18 = smov %s1032_s19 }
 0x223   : > { %p19_p0 = scmp.ge.s32.totalorder %s22_s23, 4   ;;  %s1311_s19 = smov %s1036_s20 }
 0x224   : > { %s1312_s20 = smov %s1192_s12  ;;  %s1313_s21 = smov %s1044_s22 }
 0x225   : > { %s1314_s22 = smov %s1316_s25  ;;  %21 = sbr.rel (!%p19_p0) target bundleno = 9 (0x9), region = 106 }
 0x22a   :  { %590 = vsyncpa [#allocation4], 1 }
 0x22b   :  { %592 = vsyncpa [#allocation4 + $0x1], 1 }
 0x22c   :  { %593 = vsyncpa [#allocation7], 1 }
 0x22d   :  { %594 = vsyncpa [#allocation5], 1 }
 0x22e   :  { %596 = vsyncpa [#allocation5 + $0x1], 1 }

</bundles_post_ra>
